<compile_context>
chip_gen: v7x
topology: tpu7x:2x2x1
jax: 0.10.0
libtpu: 0.0.40
codegen_flags: <defaults>
</compile_context>

<pallas_src>
import jax
import jax.numpy as jnp
from jax.experimental import pallas as pl
from jax.experimental.pallas import tpu as pltpu


def _attention_kernel(g_ref, x_ref, wg_ref, wx_ref, b1_ref, wp_ref, bp_ref,
                      out_ref):
    # g_ref/x_ref: (1, C, T) channels-first tiles; T is the lane-dense axis.
    g = g_ref[0]          # (F_g, T)
    x = x_ref[0]          # (F_l, T)
    wg = wg_ref[...]      # (F_int, F_g)
    wx = wx_ref[...]      # (F_int, F_l)

    f_int, f_g = wg.shape
    f_l = wx.shape[1]
    t = g.shape[-1]

    # relu(W_g g + W_x x + (b_g + b_x)) as unrolled VPU broadcast-MACs.
    acc = jnp.broadcast_to(b1_ref[...], (f_int, t))        # combined bias
    for c in range(f_g):
        acc = acc + wg[:, c:c + 1] * g[c:c + 1, :]          # (F_int,1)*(1,T)
    for c in range(f_l):
        acc = acc + wx[:, c:c + 1] * x[c:c + 1, :]
    h = jnp.maximum(acc, 0.0)                               # (F_int, T)

    # psi: F_int -> 1 projection as a cross-sublane reduce, then sigmoid.
    psi = jnp.sum(h * wp_ref[...], axis=0, keepdims=True) + bp_ref[...]
    psi = jax.nn.sigmoid(psi)                               # (1, T)

    # Gate x by psi (sublane broadcast over channels); lane-dense store.
    out_ref[0] = (x * psi).astype(out_ref.dtype)


def _fold_bn(w, b, gamma, beta, mean, var, eps=1e-5):
    """Fold eval-mode BatchNorm into a pointwise conv (w: (Cin, Cout), b: (Cout,))."""
    scale = gamma / jnp.sqrt(var + eps)
    w_f = w * scale[None, :]
    b_f = (b - mean) * scale + beta
    return w_f, b_f


def _choose_tile(S, max_tile):
    """Pick a lane-dense spatial tile and (possibly padded) spatial extent."""
    max_tile = max(128, (max_tile // 128) * 128)
    if S <= max_tile:
        return S, S                      # single block == full dim (always legal)
    if S % 128 == 0:
        best = 128
        for t in range(128, max_tile + 1, 128):
            if S % t == 0:
                best = t
        return best, S
    # Fallback: pad the spatial axis up to a multiple of a 128-aligned tile.
    tile = max_tile
    s_pad = (S + tile - 1) // tile * tile
    return tile, s_pad


def attention_block(g, x, params, *, max_tile_s=8192):
    """g: (N, F_g, D, H, W), x: (N, F_l, D, H, W)  (NCDHW, float32).

    Returns x * psi with the same NCDHW shape as x (eval-mode BN semantics).
    """
    N, F_g, D, H, W = g.shape
    _, F_l, _, _, _ = x.shape
    F_int = params["wg"].shape[1]
    S = D * H * W

    # Fold BN (eval mode) into the 1x1x1 convs; transpose weights to (Cout, Cin).
    wg, bg = _fold_bn(params["wg"], params["bg"], params["bn_g_gamma"],
                      params["bn_g_beta"], params["bn_g_mean"], params["bn_g_var"])
    wx, bx = _fold_bn(params["wx"], params["bx"], params["bn_x_gamma"],
                      params["bn_x_beta"], params["bn_x_mean"], params["bn_x_var"])
    wp, bp = _fold_bn(params["wp"], params["bp"], params["bn_p_gamma"],
                      params["bn_p_beta"], params["bn_p_mean"], params["bn_p_var"])

    wg_cf = wg.T                                  # (F_int, F_g)
    wx_cf = wx.T                                  # (F_int, F_l)
    b1 = (bg + bx).reshape(F_int, 1)              # combined branch bias
    wp_cf = wp.reshape(F_int, 1)
    bp_cf = bp.reshape(1, 1)

    # Channels-first flatten: NCDHW -> (N, C, S). Free reshape, no transpose.
    g2 = g.reshape(N, F_g, S)
    x2 = x.reshape(N, F_l, S)

    tile_s, s_pad = _choose_tile(S, max_tile_s)
    if s_pad != S:
        g2 = jnp.pad(g2, ((0, 0), (0, 0), (0, s_pad - S)))
        x2 = jnp.pad(x2, ((0, 0), (0, 0), (0, s_pad - S)))

    grid = (N, s_pad // tile_s)

    def tile_spec(c):
        return pl.BlockSpec((1, c, tile_s), lambda n, s: (n, 0, s))

    def full2(shape):
        return pl.BlockSpec(shape, lambda n, s: (0, 0))

    p_total = N * s_pad
    cost = pl.CostEstimate(
        flops=p_total * (2 * (F_g + F_l) * F_int + 2 * F_int + F_l),
        transcendentals=p_total,
        bytes_accessed=4 * p_total * (F_g + 2 * F_l)
        + 4 * (wg_cf.size + wx_cf.size + b1.size + wp_cf.size + bp_cf.size),
    )

    out2 = pl.pallas_call(
        _attention_kernel,
        out_shape=jax.ShapeDtypeStruct((N, F_l, s_pad), x.dtype),
        grid_spec=pltpu.PrefetchScalarGridSpec(
            num_scalar_prefetch=0,
            grid=grid,
            in_specs=[
                tile_spec(F_g),            # g tile   (1, F_g, tile_s)
                tile_spec(F_l),            # x tile   (1, F_l, tile_s)
                full2((F_int, F_g)),       # wg (folded, channels-first)
                full2((F_int, F_l)),       # wx (folded, channels-first)
                full2((F_int, 1)),         # combined bias bg+bx
                full2((F_int, 1)),         # wp
                full2((1, 1)),             # bp
            ],
            out_specs=tile_spec(F_l),
        ),
        compiler_params=pltpu.CompilerParams(
            dimension_semantics=("parallel", "parallel")),
        cost_estimate=cost,
    )(g2, x2, wg_cf, wx_cf, b1, wp_cf, bp_cf)

    if s_pad != S:
        out2 = out2[:, :, :S]
    return out2.reshape(N, F_l, D, H, W)


def _reference(g, x, params):
    """Pure-JAX reference of the same (eval-mode BN) forward pass."""
    def branch(t, w, b, gamma, beta, mean, var, eps=1e-5):
        y = jnp.einsum("ncdhw,ck->nkdhw", t, w) + b[None, :, None, None, None]
        scale = gamma / jnp.sqrt(var + eps)
        return (y - mean[None, :, None, None, None]) * scale[None, :, None, None, None] \
               + beta[None, :, None, None, None]

    g1 = branch(g, params["wg"], params["bg"], params["bn_g_gamma"],
                params["bn_g_beta"], params["bn_g_mean"], params["bn_g_var"])
    x1 = branch(x, params["wx"], params["bx"], params["bn_x_gamma"],
                params["bn_x_beta"], params["bn_x_mean"], params["bn_x_var"])
    h = jnp.maximum(g1 + x1, 0.0)
    psi = branch(h, params["wp"], params["bp"], params["bn_p_gamma"],
                 params["bn_p_beta"], params["bn_p_mean"], params["bn_p_var"])
    psi = jax.nn.sigmoid(psi)
    return x * psi


def make_params(key, F_g, F_l, F_int):
    ks = jax.random.split(key, 9)
    p = {
        # conv weights stored as (Cin, Cout); PyTorch's (Cout, Cin, 1, 1, 1) transposed
        "wg": 0.1 * jax.random.normal(ks[0], (F_g, F_int), jnp.float32),
        "bg": 0.1 * jax.random.normal(ks[1], (F_int,), jnp.float32),
        "wx": 0.1 * jax.random.normal(ks[2], (F_l, F_int), jnp.float32),
        "bx": 0.1 * jax.random.normal(ks[3], (F_int,), jnp.float32),
        "wp": 0.1 * jax.random.normal(ks[4], (F_int, 1), jnp.float32),
        "bp": 0.1 * jax.random.normal(ks[5], (1,), jnp.float32),
        # BatchNorm (eval-mode) parameters, deterministic non-trivial values
        "bn_g_gamma": 1.0 + 0.05 * jax.random.normal(ks[6], (F_int,), jnp.float32),
        "bn_g_beta": jnp.full((F_int,), 0.01, jnp.float32),
        "bn_g_mean": jnp.zeros((F_int,), jnp.float32),
        "bn_g_var": jnp.ones((F_int,), jnp.float32),
        "bn_x_gamma": 1.0 + 0.05 * jax.random.normal(ks[7], (F_int,), jnp.float32),
        "bn_x_beta": jnp.full((F_int,), -0.01, jnp.float32),
        "bn_x_mean": jnp.zeros((F_int,), jnp.float32),
        "bn_x_var": jnp.ones((F_int,), jnp.float32),
        "bn_p_gamma": 1.0 + 0.05 * jax.random.normal(ks[8], (1,), jnp.float32),
        "bn_p_beta": jnp.zeros((1,), jnp.float32),
        "bn_p_mean": jnp.zeros((1,), jnp.float32),
        "bn_p_var": jnp.ones((1,), jnp.float32),
    }
    return p


if __name__ == "__main__":
    key = jax.random.PRNGKey(0)
    kg, kx, kp = jax.random.split(key, 3)

    # Small shapes: N=2, F_g=F_l=4, F_int=8, D=4, H=16, W=16  (S = 1024)
    N, F_g, F_l, F_int, D, H, W = 2, 4, 4, 8, 4, 16, 16
    g = jax.random.normal(kg, (N, F_g, D, H, W), jnp.float32)
    x = jax.random.normal(kx, (N, F_l, D, H, W), jnp.float32)
    params = make_params(kp, F_g, F_l, F_int)

    out = attention_block(g, x, params)
    out = jax.block_until_ready(out)

    ref = _reference(g, x, params)
    assert out.shape == x.shape
    assert jnp.allclose(out, ref, atol=1e-5, rtol=1e-5), "mismatch vs reference"

    print("KERNEL_OK")
</pallas_src>

<mosaic_0001>
module attributes {stable_mosaic.version = 11 : i64} {
  func.func @_attention_kernel(%arg0: i32, %arg1: i32, %arg2: memref<1x4x1024xf32, #tpu.memory_space<vmem>>, %arg3: memref<1x4x1024xf32, #tpu.memory_space<vmem>>, %arg4: memref<8x4xf32, #tpu.memory_space<vmem>>, %arg5: memref<8x4xf32, #tpu.memory_space<vmem>>, %arg6: memref<8x1xf32, #tpu.memory_space<vmem>>, %arg7: memref<8x1xf32, #tpu.memory_space<vmem>>, %arg8: memref<1x1xf32, #tpu.memory_space<vmem>>, %arg9: memref<1x4x1024xf32, #tpu.memory_space<vmem>>) attributes {dimension_semantics = [#tpu.dimension_semantics<parallel>, #tpu.dimension_semantics<parallel>], iteration_bounds = array<i64: 2, 1>, scalar_prefetch = 0 : i64, scratch_operands = 0 : i64, tpu.core_type = #tpu.core_type<tc>, window_params = [{transform_indices = @transform_0, window_bounds = array<i64: 1, 4, 1024>}, {transform_indices = @transform_1, window_bounds = array<i64: 1, 4, 1024>}, {pipeline_mode = #tpu.pipeline_mode<synchronous>, transform_indices = @transform_2, window_bounds = array<i64: 8, 4>}, {pipeline_mode = #tpu.pipeline_mode<synchronous>, transform_indices = @transform_3, window_bounds = array<i64: 8, 4>}, {pipeline_mode = #tpu.pipeline_mode<synchronous>, transform_indices = @transform_4, window_bounds = array<i64: 8, 1>}, {pipeline_mode = #tpu.pipeline_mode<synchronous>, transform_indices = @transform_5, window_bounds = array<i64: 8, 1>}, {pipeline_mode = #tpu.pipeline_mode<synchronous>, transform_indices = @transform_6, window_bounds = array<i64: 1, 1>}, {transform_indices = @transform_7, window_bounds = array<i64: 1, 4, 1024>}]} {
    %c0 = arith.constant 0 : index
    %c0_0 = arith.constant 0 : index
    %c0_1 = arith.constant 0 : index
    %0 = vector.load %arg2[%c0, %c0_0, %c0_1] : memref<1x4x1024xf32, #tpu.memory_space<vmem>>, vector<1x4x1024xf32>
    %1 = vector.shape_cast %0 : vector<1x4x1024xf32> to vector<4x1024xf32>
    %c0_2 = arith.constant 0 : index
    %c0_3 = arith.constant 0 : index
    %c0_4 = arith.constant 0 : index
    %2 = vector.load %arg3[%c0_2, %c0_3, %c0_4] : memref<1x4x1024xf32, #tpu.memory_space<vmem>>, vector<1x4x1024xf32>
    %3 = vector.shape_cast %2 : vector<1x4x1024xf32> to vector<4x1024xf32>
    %c0_5 = arith.constant 0 : index
    %c0_6 = arith.constant 0 : index
    %4 = vector.load %arg4[%c0_5, %c0_6] : memref<8x4xf32, #tpu.memory_space<vmem>>, vector<8x4xf32>
    %c0_7 = arith.constant 0 : index
    %c0_8 = arith.constant 0 : index
    %5 = vector.load %arg5[%c0_7, %c0_8] : memref<8x4xf32, #tpu.memory_space<vmem>>, vector<8x4xf32>
    %c0_9 = arith.constant 0 : index
    %c0_10 = arith.constant 0 : index
    %6 = vector.load %arg6[%c0_9, %c0_10] : memref<8x1xf32, #tpu.memory_space<vmem>>, vector<8x1xf32>
    %7 = vector.shape_cast %6 : vector<8x1xf32> to vector<8x1xf32>
    %8 = vector.broadcast %7 : vector<8x1xf32> to vector<8x1024xf32>
    %9 = vector.extract_strided_slice %4 {offsets = [0, 0], sizes = [8, 1], strides = [1, 1]} : vector<8x4xf32> to vector<8x1xf32>
    %10 = vector.extract_strided_slice %1 {offsets = [0, 0], sizes = [1, 1024], strides = [1, 1]} : vector<4x1024xf32> to vector<1x1024xf32>
    %11 = vector.broadcast %9 : vector<8x1xf32> to vector<8x1024xf32>
    %12 = vector.broadcast %10 : vector<1x1024xf32> to vector<8x1024xf32>
    %13 = arith.mulf %11, %12 : vector<8x1024xf32>
    %14 = arith.addf %8, %13 : vector<8x1024xf32>
    %15 = vector.extract_strided_slice %4 {offsets = [0, 1], sizes = [8, 1], strides = [1, 1]} : vector<8x4xf32> to vector<8x1xf32>
    %16 = vector.extract_strided_slice %1 {offsets = [1, 0], sizes = [1, 1024], strides = [1, 1]} : vector<4x1024xf32> to vector<1x1024xf32>
    %17 = vector.broadcast %15 : vector<8x1xf32> to vector<8x1024xf32>
    %18 = vector.broadcast %16 : vector<1x1024xf32> to vector<8x1024xf32>
    %19 = arith.mulf %17, %18 : vector<8x1024xf32>
    %20 = arith.addf %14, %19 : vector<8x1024xf32>
    %21 = vector.extract_strided_slice %4 {offsets = [0, 2], sizes = [8, 1], strides = [1, 1]} : vector<8x4xf32> to vector<8x1xf32>
    %22 = vector.extract_strided_slice %1 {offsets = [2, 0], sizes = [1, 1024], strides = [1, 1]} : vector<4x1024xf32> to vector<1x1024xf32>
    %23 = vector.broadcast %21 : vector<8x1xf32> to vector<8x1024xf32>
    %24 = vector.broadcast %22 : vector<1x1024xf32> to vector<8x1024xf32>
    %25 = arith.mulf %23, %24 : vector<8x1024xf32>
    %26 = arith.addf %20, %25 : vector<8x1024xf32>
    %27 = vector.extract_strided_slice %4 {offsets = [0, 3], sizes = [8, 1], strides = [1, 1]} : vector<8x4xf32> to vector<8x1xf32>
    %28 = vector.extract_strided_slice %1 {offsets = [3, 0], sizes = [1, 1024], strides = [1, 1]} : vector<4x1024xf32> to vector<1x1024xf32>
    %29 = vector.broadcast %27 : vector<8x1xf32> to vector<8x1024xf32>
    %30 = vector.broadcast %28 : vector<1x1024xf32> to vector<8x1024xf32>
    %31 = arith.mulf %29, %30 : vector<8x1024xf32>
    %32 = arith.addf %26, %31 : vector<8x1024xf32>
    %33 = vector.extract_strided_slice %5 {offsets = [0, 0], sizes = [8, 1], strides = [1, 1]} : vector<8x4xf32> to vector<8x1xf32>
    %34 = vector.extract_strided_slice %3 {offsets = [0, 0], sizes = [1, 1024], strides = [1, 1]} : vector<4x1024xf32> to vector<1x1024xf32>
    %35 = vector.broadcast %33 : vector<8x1xf32> to vector<8x1024xf32>
    %36 = vector.broadcast %34 : vector<1x1024xf32> to vector<8x1024xf32>
    %37 = arith.mulf %35, %36 : vector<8x1024xf32>
    %38 = arith.addf %32, %37 : vector<8x1024xf32>
    %39 = vector.extract_strided_slice %5 {offsets = [0, 1], sizes = [8, 1], strides = [1, 1]} : vector<8x4xf32> to vector<8x1xf32>
    %40 = vector.extract_strided_slice %3 {offsets = [1, 0], sizes = [1, 1024], strides = [1, 1]} : vector<4x1024xf32> to vector<1x1024xf32>
    %41 = vector.broadcast %39 : vector<8x1xf32> to vector<8x1024xf32>
    %42 = vector.broadcast %40 : vector<1x1024xf32> to vector<8x1024xf32>
    %43 = arith.mulf %41, %42 : vector<8x1024xf32>
    %44 = arith.addf %38, %43 : vector<8x1024xf32>
    %45 = vector.extract_strided_slice %5 {offsets = [0, 2], sizes = [8, 1], strides = [1, 1]} : vector<8x4xf32> to vector<8x1xf32>
    %46 = vector.extract_strided_slice %3 {offsets = [2, 0], sizes = [1, 1024], strides = [1, 1]} : vector<4x1024xf32> to vector<1x1024xf32>
    %47 = vector.broadcast %45 : vector<8x1xf32> to vector<8x1024xf32>
    %48 = vector.broadcast %46 : vector<1x1024xf32> to vector<8x1024xf32>
    %49 = arith.mulf %47, %48 : vector<8x1024xf32>
    %50 = arith.addf %44, %49 : vector<8x1024xf32>
    %51 = vector.extract_strided_slice %5 {offsets = [0, 3], sizes = [8, 1], strides = [1, 1]} : vector<8x4xf32> to vector<8x1xf32>
    %52 = vector.extract_strided_slice %3 {offsets = [3, 0], sizes = [1, 1024], strides = [1, 1]} : vector<4x1024xf32> to vector<1x1024xf32>
    %53 = vector.broadcast %51 : vector<8x1xf32> to vector<8x1024xf32>
    %54 = vector.broadcast %52 : vector<1x1024xf32> to vector<8x1024xf32>
    %55 = arith.mulf %53, %54 : vector<8x1024xf32>
    %56 = arith.addf %50, %55 : vector<8x1024xf32>
    %cst = arith.constant 0.000000e+00 : f32
    %57 = vector.broadcast %cst : f32 to vector<8x1024xf32>
    %58 = arith.maximumf %56, %57 : vector<8x1024xf32>
    %c0_11 = arith.constant 0 : index
    %c0_12 = arith.constant 0 : index
    %59 = vector.load %arg7[%c0_11, %c0_12] : memref<8x1xf32, #tpu.memory_space<vmem>>, vector<8x1xf32>
    %60 = vector.broadcast %59 : vector<8x1xf32> to vector<8x1024xf32>
    %61 = arith.mulf %58, %60 : vector<8x1024xf32>
    %cst_13 = arith.constant dense<0.000000e+00> : vector<1024xf32>
    %62 = vector.multi_reduction <add>, %61, %cst_13 [0] : vector<8x1024xf32> to vector<1024xf32>
    %63 = vector.shape_cast %62 : vector<1024xf32> to vector<1x1024xf32>
    %c0_14 = arith.constant 0 : index
    %c0_15 = arith.constant 0 : index
    %64 = vector.load %arg8[%c0_14, %c0_15] : memref<1x1xf32, #tpu.memory_space<vmem>>, vector<1x1xf32>
    %65 = vector.broadcast %64 : vector<1x1xf32> to vector<1x1024xf32>
    %66 = arith.addf %63, %65 : vector<1x1024xf32>
    %67 = arith.negf %66 : vector<1x1024xf32>
    %68 = math.exp %67 : vector<1x1024xf32>
    %cst_16 = arith.constant 1.000000e+00 : f32
    %69 = vector.broadcast %cst_16 : f32 to vector<1x1024xf32>
    %70 = arith.addf %69, %68 : vector<1x1024xf32>
    %71 = arith.divf %69, %70 : vector<1x1024xf32>
    %72 = vector.broadcast %71 : vector<1x1024xf32> to vector<4x1024xf32>
    %73 = arith.mulf %3, %72 : vector<4x1024xf32>
    %c0_17 = arith.constant 0 : index
    %c0_18 = arith.constant 0 : index
    %c0_19 = arith.constant 0 : index
    %74 = vector.load %arg9[%c0_17, %c0_18, %c0_19] : memref<1x4x1024xf32, #tpu.memory_space<vmem>>, vector<1x4x1024xf32>
    %75 = vector.shape_cast %74 : vector<1x4x1024xf32> to vector<4x1024xf32>
    %76 = vector.shape_cast %73 : vector<4x1024xf32> to vector<1x4x1024xf32>
    tpu.vector_store %arg9[%c0_17, %c0_18, %c0_19], %76 {strides = array<i32>} : memref<1x4x1024xf32, #tpu.memory_space<vmem>>, vector<1x4x1024xf32>,
    return
  }
  func.func @transform_0(%arg0: i32, %arg1: i32) -> (i32, i32, i32) {
    %c0_i32 = arith.constant 0 : i32
    %c0_i32_0 = arith.constant 0 : i32
    return %arg0, %c0_i32, %arg1 : i32, i32, i32
  }
  func.func @transform_1(%arg0: i32, %arg1: i32) -> (i32, i32, i32) {
    %c0_i32 = arith.constant 0 : i32
    %c0_i32_0 = arith.constant 0 : i32
    return %arg0, %c0_i32, %arg1 : i32, i32, i32
  }
  func.func @transform_2(%arg0: i32, %arg1: i32) -> (i32, i32) {
    %c0_i32 = arith.constant 0 : i32
    %c0_i32_0 = arith.constant 0 : i32
    %c0_i32_1 = arith.constant 0 : i32
    return %c0_i32, %c0_i32_0 : i32, i32
  }
  func.func @transform_3(%arg0: i32, %arg1: i32) -> (i32, i32) {
    %c0_i32 = arith.constant 0 : i32
    %c0_i32_0 = arith.constant 0 : i32
    %c0_i32_1 = arith.constant 0 : i32
    return %c0_i32, %c0_i32_0 : i32, i32
  }
  func.func @transform_4(%arg0: i32, %arg1: i32) -> (i32, i32) {
    %c0_i32 = arith.constant 0 : i32
    %c0_i32_0 = arith.constant 0 : i32
    %c0_i32_1 = arith.constant 0 : i32
    return %c0_i32, %c0_i32_0 : i32, i32
  }
  func.func @transform_5(%arg0: i32, %arg1: i32) -> (i32, i32) {
    %c0_i32 = arith.constant 0 : i32
    %c0_i32_0 = arith.constant 0 : i32
    %c0_i32_1 = arith.constant 0 : i32
    return %c0_i32, %c0_i32_0 : i32, i32
  }
  func.func @transform_6(%arg0: i32, %arg1: i32) -> (i32, i32) {
    %c0_i32 = arith.constant 0 : i32
    %c0_i32_0 = arith.constant 0 : i32
    %c0_i32_1 = arith.constant 0 : i32
    return %c0_i32, %c0_i32_0 : i32, i32
  }
  func.func @transform_7(%arg0: i32, %arg1: i32) -> (i32, i32, i32) {
    %c0_i32 = arith.constant 0 : i32
    %c0_i32_0 = arith.constant 0 : i32
    return %arg0, %c0_i32, %arg1 : i32, i32, i32
  }
}

</mosaic_0001>

<bundles_post_ra>
// kernel: tpu_custom_call.1
= control target key start
LH: loop header
LB: loop body
LE: loop exit
PB: predicated region body
PF: predicated region fallthrough
CT: control target
= control target key end

     0   :  { %s2420_s0 = inlined_call_operand.hbm [shape: f32[2,4,1024], index: 0, kind: input, shape index: {}]   ;;  %s2421_s1 = inlined_call_operand.hbm [shape: f32[2,4,1024], index: 1, kind: input, shape index: {}]   ;;  %s2422_s2 = inlined_call_operand.vmem [shape: f32[8,4], index: 2, kind: input, shape index: {}]   ;;  %s2423_s3 = inlined_call_operand.vmem [shape: f32[8,4], index: 3, kind: input, shape index: {}]   ;;  %s2424_s4 = inlined_call_operand.vmem [shape: f32[8,1], index: 4, kind: input, shape index: {}]   ;;  %s2425_s5 = inlined_call_operand.vmem [shape: f32[8,1], index: 5, kind: input, shape index: {}]   ;;  %s2426_s6 = inlined_call_operand.<no memory space> [shape: f32[1,1], index: 6, kind: input, shape index: {}]   ;;  %s2427_s7 = inlined_call_operand.hbm [shape: f32[2,4,1024], index: 7, kind: output, shape index: {}]  }
   0x1   :  { %2436 = sst [smem:[#allocation37_spill]] %s2420_s0  ;;  %v12_v0 = vstv %s2426_s6 }
   0x2   :  { %13 = vst [vmem:[#allocation2] sm:$0x1] %v12_v0 }
   0x3   :  { %14 = vsyncpa [#allocation4], 0 }
   0x4   :  { %16 = vsyncpa [#allocation4 + $0x1], 0 }
   0x5   :  { %17 = vsyncpa [#allocation7], 0 }
   0x6   :  { %19 = vsyncpa [#allocation7 + $0x1], 0 }
   0x7   :  { %20 = vsyncpa [#allocation5], 0 }
   0x8   :  { %22 = vsyncpa [#allocation5 + $0x1], 0  ;;  %s1750_s26 = smov 0   ;;  %s1752_s27 = smov 0  }
   0x9   :  { %s1754_s28 = smov 0   ;;  %s1756_s29 = smov 0  }
   0xa   :  { %s1758_s30 = smov 0   ;;  %s1760_s8 = smov 0  }
   0xb LB: > { %s1409_s6 = sadd.s32 4294967295, %s1698_s8   ;;  %s1410_s9 = sadd.s32 4294967294, %s1698_s8   ;;  %s1698_s8 = sphi %s1760_s8, %s28_s8   ;;  %s1694_s30 = sphi %s1758_s30, %s2506_s30   ;;  %s1690_s29 = sphi %s1756_s29, %s2505_s29   ;;  %s1686_s28 = sphi %s1754_s28, %s2504_s28   ;;  %s1682_s27 = sphi %s1752_s27, %s2503_s27   ;;  %s1678_s26 = sphi %s1750_s26, %s2502_s26  }
   0xc   : > { %s40_s10 = sadd.s32 1, %s1694_s30  ;;  %s49_s11 = sadd.s32 1, %s1686_s28 }
   0xd   : > { %p42_p0 = scmp.ge.s32.totalorder %s40_s10, 2  ;;  %p56_p1 = scmp.ne.s32.totalorder %s1686_s28, %s1682_s27 }
   0xe   : > { %p57_p2 = scmp.eq.s32.totalorder %s1698_s8, 0  ;;  %p62_p3 = scmp.ne.s32.totalorder %s1682_s27, %s1678_s26 }
   0xf   : > { %s2508_s10 = smov (%p42_p0, %s40_s10), 0  ;;  %p63_p5 = scmp.eq.s32.totalorder %s1409_s6, 0 }
  0x10   : > { %p1791_p4 = por %p57_p2, %p56_p1  ;;  %s44_s13 = ssub.s32 %s1694_s30, %s2508_s10 }
  0x11   : > { %p221_p6 = scmp.eq.s32.totalorder %s1409_s6, 1  ;;  %p47_p7 = scmp.eq.s32.totalorder %s44_s13, 0 }
  0x12   : > { %p1797_p8 = por %p63_p5, %p62_p3  ;;  %p227_p10 = scmp.eq.s32.totalorder %s1410_s9, 1 }
  0x13   : > { %p1801_p9 = por %p221_p6, %p56_p1  ;;  %p1456_p13 = scmp.lt.s32.totalorder %s1698_s8, 2 }
  0x14   : > { %s2438_s14 = scalar_select %p1797_p8, 1, 0 }
  0x15   : > { %s2439_s15 = scalar_select %p1801_p9, 1, 0 }
  0x16   : > { %s1806_s16 = scalar_select %p47_p7, %s1686_s28, %s49_s11  }
  0x17   : > { %p1808_p11 = por %p227_p10, %p62_p3  ;;  %s1815_s18 = sand.u32 1, %s1686_s28  }
  0x18   : > { %s2428_s19 = sshll.u32 %s1815_s18, 5  ;;  %s1436_s20 = sshll.u32 %s1694_s30, 9 }
  0x19   : > { %s2440_s17 = scalar_select %p1808_p11, 1, 0 }
  0x1a   : > { %s2441_s0 = sld [smem:[#allocation37_spill]]  ;;  %s266_s24 = scalar_lea.vmem [#allocation3], %s2428_s19 }
  0x1b   : > { %s276_s25 = sshll.u32 %s266_s24, 4  ;;  %p1832_p0 = pnand %p1456_p13, %p1791_p4  ;;  %s1828_s25 = int_to_ptr.vmem [resolvable:$true] %s276_s25 }
  0x1c   : > { %s263_s9 = scalar_lea.sflag [#allocation4], %s1815_s18 }
  0x1d   : > { %p1554_p5 = pneg %p1832_p0 }
  0x20   : > { %s1824_s23 = scalar_lea.hbm %s2441_s0, %s1436_s20  ;;  %s1557_s12 = scalar_lea.hbm %s2441_s0, 1024 }
  0x21   : > { %s1552_s11 = scalar_lea.hbm %s1824_s23, 512  ;;  %p1558_p4 = scmp.lt.u32.totalorder %s1824_s23, %s2441_s0 }
  0x22   : > { %p1553_p3 = scmp.ne.s32.totalorder %s1824_s23, %s1552_s11  ;;  %p1559_p10 = scmp.lt.u32.totalorder %s1557_s12, %s1552_s11 }
  0x23   : > { %p1561_p12 = scmp.lt.u32.totalorder %s1552_s11, %s1824_s23 }
  0x24   : > { %p1555_p6 = pnand %p1554_p5, %p1553_p3  ;;  %p1560_p13 = por %p1559_p10, %p1558_p4 }
  0x26   : > { %p1556_p7 = pneg %p1555_p6  ;;  %p1562_p1 = por %p1561_p12, %p1560_p13 }
  0x28   : > { %p1563_p2 = pnand %p1562_p1, %p1556_p7 }
  0x2a   : > { %1566 = shalt.err (!%p1563_p2)
}
  0x2b   : > { %s1567_s19 = scalar_lea.vmem %s1828_s25, 512  ;;  %s1700_s13 = smov [#allocation3]  }
  0x2c   : > { %p1568_p3 = scmp.ne.s32.totalorder %s1828_s25, %s1567_s19  ;;  %s1572_s21 = sshll.u32 %s1700_s13, 4  ;;  %s1573_s21 = int_to_ptr.vmem [resolvable:$false] %s1572_s21 }
  0x2d   : > { %s1574_s22 = scalar_lea.vmem %s1573_s21, 1024  ;;  %p1575_p9 = scmp.lt.s32.totalorder %s1828_s25, %s1573_s21 }
  0x2e   : > { %p1570_p6 = pnand %p1568_p3, %p1554_p5  ;;  %p1576_p4 = scmp.lt.s32.totalorder %s1574_s22, %s1567_s19 }
  0x30   : > { %p1571_p11 = pneg %p1570_p6  ;;  %p1577_p10 = por %p1576_p4, %p1575_p9 }
  0x32   : > { %p1578_p12 = pnand %p1577_p10, %p1571_p11 }
  0x34   : > { %1581 = shalt.err (!%p1578_p12)
}
  0x35   : > { %1448 = dma.hbm_to_vmem [thread:$0]  (!%p1832_p0), %s1824_s23, 512, %s1828_s25, %s263_s9  }
  0x36   : > { %p2443_p1 = scmp.lt.s32.totalorder %s1698_s8, 3  ;;  %p2444_p2 = scmp.ge.s32.totalorder %s1698_s8, 1 }
  0x37   : > { %s1877_s24 = scalar_lea.hbm %s2421_s1, %s1436_s20  ;;  %s2446_s13 = sshll.u32 %s1815_s18, 5 }
  0x38   : > { %p1868_p7 = pnand %p2444_p2, %p2443_p1  ;;  %s287_s21 = scalar_lea.vmem [#allocation6], %s2446_s13 }
  0x39   : > { %s297_s22 = sshll.u32 %s287_s21, 4  ;;  %s284_s23 = scalar_lea.sflag [#allocation7], %s1815_s18  ;;  %s298_s22 = int_to_ptr.vmem [resolvable:$true] %s297_s22 }
  0x3a   : > { %s2445_s11 = scalar_select %p1868_p7, 1, 0 }
  0x3b   : > { %s1582_s25 = scalar_lea.hbm %s1877_s24, 512  ;;  %s1587_s20 = scalar_lea.hbm %s2421_s1, 1024 }
  0x3c   : > { %p1583_p9 = scmp.ne.s32.totalorder %s1877_s24, %s1582_s25  ;;  %p1588_p3 = scmp.lt.u32.totalorder %s1877_s24, %s2421_s1 }
  0x3d   : > { %p1589_p6 = scmp.lt.u32.totalorder %s1587_s20, %s1582_s25  ;;  %p1591_p10 = scmp.lt.u32.totalorder %s1582_s25, %s1877_s24 }
  0x3e   : > { %p1585_p11 = pnand %p1583_p9, %p1554_p5 }
  0x3f   : > { %p1590_p4 = por %p1589_p6, %p1588_p3 }
  0x40   : > { %p1586_p13 = pneg %p1585_p11 }
  0x41   : > { %p1592_p12 = por %p1591_p10, %p1590_p4 }
  0x43   : > { %p1593_p1 = pnand %p1592_p12, %p1586_p13 }
  0x45   : > { %1596 = shalt.err (!%p1593_p1)
}
  0x46   : > { %s1597_s18 = scalar_lea.vmem %s298_s22, 512  ;;  %s1701_s13 = smov [#allocation6]  }
  0x47   : > { %p1598_p2 = scmp.ne.s32.totalorder %s298_s22, %s1597_s18  ;;  %s1602_s0 = sshll.u32 %s1701_s13, 4  ;;  %s1603_s0 = int_to_ptr.vmem [resolvable:$false] %s1602_s0 }
  0x48   : > { %s1604_s21 = scalar_lea.vmem %s1603_s0, 1024  ;;  %p1605_p8 = scmp.lt.s32.totalorder %s298_s22, %s1603_s0 }
  0x49   : > { %p1600_p9 = pnand %p1598_p2, %p1554_p5  ;;  %p1606_p7 = scmp.lt.s32.totalorder %s1604_s21, %s1597_s18 }
  0x4b   : > { %p1601_p11 = pneg %p1600_p9  ;;  %p1607_p3 = por %p1606_p7, %p1605_p8 }
  0x4d   : > { %p1608_p6 = pnand %p1607_p3, %p1601_p11 }
  0x4f   : > { %1611 = shalt.err (!%p1608_p6)
}
  0x50   : > { %1451 = dma.hbm_to_vmem [thread:$0]  (!%p1832_p0), %s1877_s24, 512, %s298_s22, %s284_s23  }
  0x51   : > { %p2447_p13 = scmp.ne.s32.totalorder %s2445_s11, 0 }
  0x53   : > { %306 = sbr.rel (%p2447_p13) target bundleno = 328 (0x148), region = 48 }
  0x5a   : > { %s1904_s25 = sand.u32 1, %s1682_s27   ;;  %p2448_p8 = scmp.ne.s32.totalorder %s2438_s14, 0 }
  0x5b   : > { %s1907_s9 = sshll.u32 %s1904_s25, 5  ;;  %s309_s20 = scalar_lea.sflag [#allocation4], %s1904_s25 }
  0x5c   : > { %s1911_s19 = scalar_lea.vmem [#allocation3], %s1907_s9 }
  0x5d   : > { %1665 = dma.done.wait (%p2448_p8), %s309_s20, 512  }
  0x5e   : > { %1667 = vsyncadd (%p2448_p8), %s309_s20, 4294966784  ;;  %s318_s6 = scalar_lea.sflag [#allocation7], %s1904_s25  ;;  %s1919_s11 = scalar_lea.vmem [#allocation6], %s1907_s9 }
  0x5f   : > { %1669 = dma.done.wait (%p2448_p8), %s318_s6, 512  }
  0x60   : > { %1671 = vsyncadd (%p2448_p8), %s318_s6, 4294966784  ;;  %v1702_v1 = vmov 1   ;;  %v1703_v2 = vmov 0   ;;  %v368_v3 = vld [vmem:[%s2422_s2] sm:$0xff]  ;;  %v1704_v5 = vmov 2   ;;  %v1705_v7 = vmov 3  }
  0x61   : > { %1511 = vset.pattern.permute.xlu1 %v1702_v1  ;;  %1510 = vset.pattern.permute.xlu0 %v1703_v2  ;;  %v370_v4 = vld [vmem:[%s2424_s4] sm:$0xff]  ;;  %v385_v10 = vlaneseq  ;;  %v1947_v16 = vld [vmem:[%s1911_s19 + $0x8] sm:$0xff]  ;;  %v1950_v17 = vld [vmem:[%s1911_s19 + $0x10] sm:$0xff]  ;;  %s356_s21 = scalar_lea.vmem [#allocation8], %s1907_s9  ;;  %s1438_s20 = sshll.u32 %s1690_s29, 9 }
  0x62   : > { %474 = vperm.xlu1 %1511, %v368_v3   ;;  %378 = vperm.xlu0 %1510, %v368_v3   ;;  %v369_v6 = vld [vmem:[%s2423_s3] sm:$0xff]  ;;  %s2371_s24 = scalar_lea.hbm %s2427_s7, %s1438_s20  ;;  %s1283_s29 = scalar_lea.sflag [#allocation5], %s1904_s25 }
  0x63   : > { %v1192_v8 = vld [vmem:[#allocation2] sm:$0x1]  ;;  %v386_v11 = vshrl.u32 %v385_v10, 7  ;;  %v1940_v13 = vld [vmem:[%s1911_s19] sm:$0xff]  ;;  %p2499_p5 = scmp.ne.s32.totalorder %s2439_s15, 0  ;;  %s1706_s22 = smov [#allocation8]  }
  0x64   : > { %v1130_v9 = vld [vmem:[%s2425_s5] sm:$0xff]  ;;  %s1616_s23 = sshll.u32 %s1706_s22, 4  ;;  %s1617_s23 = int_to_ptr.vmem [resolvable:$false] %s1616_s23 }
  0x65   : > { %v1937_v12 = vsub.s32 1, %v386_v11  ;;  %v1942_v14 = vsub.s32 5, %v386_v11  ;;  %v1944_v15 = vsub.s32 0, %v386_v11  ;;  %v1953_v18 = vld [vmem:[%s1911_s19 + $0x18] sm:$0xff]  ;;  %v1957_v20 = vsub.s32 4, %v386_v11  ;;  %s1299_s19 = sshll.u32 %s356_s21, 4  ;;  %s2373_s19 = int_to_ptr.vmem [resolvable:$true] %s1299_s19 }
  0x66   : > { %1512 = vset.pattern.permute.xlu1 %v1704_v5  ;;  %373 = vperm.xlu0 %1510, %v370_v4   ;;  %v1959_v21 = vsub.s32 2, %v386_v11  ;;  %v1961_v22 = vsub.s32 3, %v386_v11  ;;  %v1963_v23 = vsub.s32 6, %v386_v11  ;;  %v2031_v51 = vsub.s32 7, %v386_v11  ;;  %s1612_s9 = scalar_lea.vmem %s2373_s19, 512  ;;  %s1618_s12 = scalar_lea.vmem %s1617_s23, 1024 }
  0x67   : > { %566 = vperm.xlu1 %1512, %v368_v3   ;;  %2449 = vst [vmem:[#allocation12_spill] sm:$0xff] %v1944_v15  ;;  %v480_v19 = vrot.slane %v1940_v13, %v1937_v12  ;;  %v484_v24 = vrot.slane %v1940_v13, %v1942_v14  ;;  %v488_v25 = vrot.slane %v1947_v16, %v1937_v12  ;;  %p1613_p0 = scmp.ne.s32.totalorder %s2373_s19, %s1612_s9  ;;  %p1619_p10 = scmp.lt.s32.totalorder %s2373_s19, %s1617_s23 }
  0x68   : > { %v492_v26 = vrot.slane %v1947_v16, %v1942_v14  ;;  %v496_v27 = vrot.slane %v1950_v17, %v1937_v12  ;;  %v500_v28 = vrot.slane %v1950_v17, %v1942_v14  ;;  %v504_v29 = vrot.slane %v1953_v18, %v1937_v12  ;;  %p1620_p12 = scmp.lt.s32.totalorder %s1618_s12, %s1612_s9 }
  0x69   : > { %v508_v30 = vrot.slane %v1953_v18, %v1942_v14  ;;  %v388_v31 = vrot.slane %v1940_v13, %v1944_v15  ;;  %v1982_v32 = vrot.slane %v480_v19, %v1937_v12  ;;  %v392_v33 = vrot.slane %v1940_v13, %v1957_v20  ;;  %v2102_v19 = vld [vmem:[%s1919_s11] sm:$0xff]  ;;  %p1614_p7 = pnand %p1613_p0, %p2499_p5 }
  0x6a   : > { %1513 = vset.pattern.permute.xlu0 %v1705_v7  ;;  %v396_v34 = vrot.slane %v1947_v16, %v1944_v15  ;;  %v400_v35 = vrot.slane %v1947_v16, %v1957_v20  ;;  %v404_v36 = vrot.slane %v1950_v17, %v1944_v15  ;;  %v408_v37 = vrot.slane %v1950_v17, %v1957_v20  ;;  %p1621_p1 = por %p1620_p12, %p1619_p10 }
  0x6b   : > { %1514 = vset.pattern.permute.xlu1 %v1703_v2  ;;  %658 = vperm.xlu0 %1513, %v368_v3   ;;  %v412_v38 = vrot.slane %v1953_v18, %v1944_v15  ;;  %v416_v39 = vrot.slane %v1953_v18, %v1957_v20  ;;  %v1999_v40 = vrot.slane %v484_v24, %v1937_v12  ;;  %v2105_v24 = vld [vmem:[%s1919_s11 + $0x8] sm:$0xff]  ;;  %p1615_p4 = pneg %p1614_p7 }
  0x6c   : > { %751 = vperm.xlu1 %1514, %v369_v6   ;;  %v2002_v41 = vrot.slane %v488_v25, %v1937_v12  ;;  %v2005_v42 = vrot.slane %v492_v26, %v1937_v12  ;;  %v2008_v43 = vrot.slane %v496_v27, %v1937_v12  ;;  %v2011_v44 = vrot.slane %v500_v28, %v1937_v12 }
  0x6d   : > { %v2014_v45 = vrot.slane %v504_v29, %v1937_v12  ;;  %v2017_v46 = vrot.slane %v508_v30, %v1937_v12  ;;  %v2020_v47 = vrot.slane %v388_v31, %v1944_v15  ;;  %v2023_v48 = vrot.slane %v392_v33, %v1944_v15  ;;  %2450 = vst [vmem:[#allocation13_spill] sm:$0xff] %v2102_v19  ;;  %v2120_v29 = vld [vmem:[%s1919_s11 + $0x10] sm:$0xff]  ;;  %v2123_v30 = vld [vmem:[%s1919_s11 + $0x18] sm:$0xff]  ;;  %p1622_p2 = pnand %p1621_p1, %p1615_p4 }
  0x6e   : > { %v2026_v49 = vrot.slane %v396_v34, %v1944_v15  ;;  %v2029_v50 = vrot.slane %v400_v35, %v1944_v15  ;;  %v2034_v52 = vrot.slane %v404_v36, %v1944_v15  ;;  %v2037_v53 = vrot.slane %v408_v37, %v1944_v15  ;;  %2451 = vst [vmem:[#allocation14_spill] sm:$0xff] %v2105_v24 }
  0x6f   : > { %1516 = vset.pattern.permute.xlu0 %v1704_v5  ;;  %v2040_v54 = vrot.slane %v412_v38, %v1944_v15  ;;  %v2043_v55 = vrot.slane %v416_v39, %v1944_v15  ;;  %v572_v56 = vrot.slane %v1940_v13, %v1959_v21  ;;  %v576_v57 = vrot.slane %v1940_v13, %v1963_v23 }
  0x70   : > { %1515 = vset.pattern.permute.xlu1 %v1702_v1  ;;  %939 = vperm.xlu0 %1516, %v369_v6   ;;  %v580_v58 = vrot.slane %v1947_v16, %v1959_v21  ;;  %v584_v59 = vrot.slane %v1947_v16, %v1963_v23  ;;  %v588_v60 = vrot.slane %v1950_v17, %v1959_v21 }
  0x71   : > { %847 = vperm.xlu1 %1515, %v369_v6   ;;  %v592_v61 = vrot.slane %v1950_v17, %v1963_v23  ;;  %v596_v62 = vrot.slane %v1953_v18, %v1959_v21  ;;  %v600_v63 = vrot.slane %v1953_v18, %v1963_v23  ;;  %v664_v0 = vrot.slane %v1940_v13, %v1961_v22 }
  0x72   : > { %v668_v1 = vrot.slane %v1940_v13, %v2031_v51  ;;  %v676_v3 = vrot.slane %v1947_v16, %v2031_v51  ;;  %v680_v4 = vrot.slane %v1950_v17, %v1961_v22  ;;  %v684_v5 = vrot.slane %v1950_v17, %v2031_v51  ;;  %2452 = vst [vmem:[#allocation15_spill] sm:$0xff] %v2120_v29 }
  0x73   : > { %v2084_v10 = vrot.slane %v580_v58, %v1959_v21  ;;  %v2087_v11 = vrot.slane %v584_v59, %v1959_v21  ;;  %v2090_v13 = vrot.slane %v588_v60, %v1959_v21  ;;  %v2096_v17 = vrot.slane %v596_v62, %v1959_v21  ;;  %2453 = vst [vmem:[#allocation16_spill] sm:$0xff] %v2123_v30 }
  0x74   : > { %1519 = vset.pattern.permute.xlu0 %v1703_v2  ;;  %v2108_v25 = vrot.slane %v664_v0, %v1961_v22  ;;  %v2111_v26 = vrot.slane %v668_v1, %v1961_v22  ;;  %v2117_v28 = vrot.slane %v676_v3, %v1961_v22  ;;  %v2126_v31 = vrot.slane %v680_v4, %v1961_v22 }
  0x75   : > { %1517 = vset.pattern.permute.xlu1 %v1705_v7  ;;  %1195 = vperm.xlu0 %1519, %v1192_v8   ;;  %v692_v7 = vrot.slane %v1953_v18, %v2031_v51  ;;  %v2078_v8 = vrot.slane %v572_v56, %v1959_v21  ;;  %v2129_v33 = vrot.slane %v684_v5, %v1961_v22 }
  0x76   : > { %1031 = vperm.xlu1 %1517, %v369_v6   ;;  %v688_v6 = vrot.slane %v1953_v18, %v1961_v22  ;;  %v2099_v18 = vrot.slane %v600_v63, %v1959_v21  ;;  %v761_v36 = vrot.slane %v2102_v19, %v1944_v15  ;;  %v765_v37 = vrot.slane %v2102_v19, %v1957_v20 }
  0x77   : > { %v2135_v35 = vrot.slane %v692_v7, %v1961_v22  ;;  %v769_v38 = vrot.slane %v2105_v24, %v1944_v15  ;;  %v773_v39 = vrot.slane %v2105_v24, %v1957_v20  ;;  %v777_v56 = vrot.slane %v2120_v29, %v1944_v15 }
  0x78   : > { %v2132_v34 = vrot.slane %v688_v6, %v1961_v22  ;;  %v785_v58 = vrot.slane %v2123_v30, %v1944_v15  ;;  %v789_v59 = vrot.slane %v2123_v30, %v1957_v20  ;;  %v853_v60 = vrot.slane %v2102_v19, %v1937_v12 }
  0x79   : > { %2454 = vst [vmem:[#allocation17_spill] sm:$0xff] %v2135_v35  ;;  %v861_v62 = vrot.slane %v2105_v24, %v1937_v12  ;;  %v865_v63 = vrot.slane %v2105_v24, %v1942_v14  ;;  %v869_v0 = vrot.slane %v2120_v29, %v1937_v12  ;;  %v873_v1 = vrot.slane %v2120_v29, %v1942_v14 }
  0x7a   : > { %1518 = vset.pattern.permute.xlu1 %v1703_v2  ;;  %v672_v2 = vrot.slane %v1947_v16, %v1961_v22  ;;  %v2093_v16 = vrot.slane %v592_v61, %v1959_v21  ;;  %v857_v61 = vrot.slane %v2102_v19, %v1942_v14  ;;  %v2170_v3 = vrot.slane %v761_v36, %v1944_v15 }
  0x7b   : > { %1133 = vperm.xlu1 %1518, %v1130_v9   ;;  %v2081_v9 = vrot.slane %v576_v57, %v1959_v21  ;;  %v781_v57 = vrot.slane %v2120_v29, %v1957_v20  ;;  %v877_v20 = vrot.slane %v2123_v30, %v1937_v12  ;;  %v2173_v4 = vrot.slane %v765_v37, %v1944_v15 }
  0x7c   : > { %v2114_v27 = vrot.slane %v672_v2, %v1961_v22  ;;  %v881_v2 = vrot.slane %v2123_v30, %v1942_v14  ;;  %v2176_v5 = vrot.slane %v769_v38, %v1944_v15  ;;  %v2179_v6 = vrot.slane %v773_v39, %v1944_v15 }
  0x7d   : > { %v2182_v7 = vrot.slane %v777_v56, %v1944_v15  ;;  %v2185_v35 = vrot.slane %v781_v57, %v1944_v15  ;;  %v2188_v14 = vrot.slane %v785_v58, %v1944_v15  ;;  %v2191_v36 = vrot.slane %v789_v59, %v1944_v15 }
  0x7e   : > { %v2194_v37 = vrot.slane %v853_v60, %v1937_v12  ;;  %v2197_v38 = vrot.slane %v857_v61, %v1937_v12  ;;  %v2200_v39 = vrot.slane %v861_v62, %v1937_v12  ;;  %v2203_v56 = vrot.slane %v865_v63, %v1937_v12 }
  0x7f   : > { %2455 = vst [vmem:[#allocation18_spill] sm:$0xff] %v2191_v36  ;;  %v2206_v57 = vrot.slane %v869_v0, %v1937_v12  ;;  %v2209_v58 = vrot.slane %v873_v1, %v1937_v12  ;;  %v2212_v59 = vrot.slane %v877_v20, %v1937_v12  ;;  %v2215_v60 = vrot.slane %v881_v2, %v1937_v12 }
  0x80   : > { %2456 = vst [vmem:[#allocation19_spill] sm:$0xff] %v2194_v37  ;;  %2457 = vst [vmem:[#allocation20_spill] sm:$0xff] %v2197_v38  ;;  %v945_v61 = vrot.slane %v2102_v19, %v1959_v21  ;;  %v949_v62 = vrot.slane %v2102_v19, %v1963_v23  ;;  %v953_v63 = vrot.slane %v2105_v24, %v1959_v21 }
  0x81   : > { %2458 = vst [vmem:[#allocation21_spill] sm:$0xff] %v2200_v39  ;;  %2459 = vst [vmem:[#allocation22_spill] sm:$0xff] %v2203_v56  ;;  %v957_v0 = vrot.slane %v2105_v24, %v1963_v23  ;;  %v961_v1 = vrot.slane %v2120_v29, %v1959_v21  ;;  %v965_v20 = vrot.slane %v2120_v29, %v1963_v23 }
  0x82   : > { %2460 = vst [vmem:[#allocation23_spill] sm:$0xff] %v2206_v57  ;;  %2461 = vst [vmem:[#allocation24_spill] sm:$0xff] %v2209_v58  ;;  %v969_v12 = vrot.slane %v2123_v30, %v1959_v21  ;;  %v973_v2 = vrot.slane %v2123_v30, %v1963_v23  ;;  %v1037_v15 = vrot.slane %v2102_v19, %v1961_v22 }
  0x83   : > { %2462 = vst [vmem:[#allocation25_spill] sm:$0xff] %v2212_v59  ;;  %2463 = vst [vmem:[#allocation26_spill] sm:$0xff] %v2215_v60  ;;  %v1041_v60 = vrot.slane %v2102_v19, %v2031_v51  ;;  %v1045_v59 = vrot.slane %v2105_v24, %v1961_v22  ;;  %v1049_v58 = vrot.slane %v2105_v24, %v2031_v51 }
  0x84   : > { %v1053_v57 = vrot.slane %v2120_v29, %v1961_v22  ;;  %v1057_v56 = vrot.slane %v2120_v29, %v2031_v51  ;;  %v1061_v23 = vrot.slane %v2123_v30, %v1961_v22  ;;  %v1065_v39 = vrot.slane %v2123_v30, %v2031_v51 }
  0x85   : > { %v2250_v19 = vrot.slane %v945_v61, %v1959_v21  ;;  %v2253_v38 = vrot.slane %v949_v62, %v1959_v21  ;;  %v2256_v24 = vrot.slane %v953_v63, %v1959_v21  ;;  %v2259_v37 = vrot.slane %v957_v0, %v1959_v21 }
  0x86   : > { %v2262_v29 = vrot.slane %v961_v1, %v1959_v21  ;;  %v2265_v36 = vrot.slane %v965_v20, %v1959_v21  ;;  %v2268_v51 = vrot.slane %v969_v12, %v1959_v21  ;;  %v2271_v61 = vrot.slane %v973_v2, %v1959_v21 }
  0x87   : > { %v2274_v62 = vrot.slane %v1037_v15, %v1961_v22  ;;  %v2277_v63 = vrot.slane %v1041_v60, %v1961_v22  ;;  %v2280_v0 = vrot.slane %v1045_v59, %v1961_v22  ;;  %v2283_v1 = vrot.slane %v1049_v58, %v1961_v22 }
  0x88   : > { %2464 = vst [vmem:[#allocation27_spill] sm:$0xff] %v2268_v51  ;;  %2465 = vst [vmem:[#allocation28_spill] sm:$0xff] %v2271_v61  ;;  %v2286_v12 = vrot.slane %v1053_v57, %v1961_v22  ;;  %v2289_v21 = vrot.slane %v1057_v56, %v1961_v22  ;;  %v2292_v15 = vrot.slane %v1061_v23, %v1961_v22 }
  0x89   : > { %2466 = vst [vmem:[#allocation29_spill] sm:$0xff] %v2274_v62  ;;  %2467 = vst [vmem:[#allocation30_spill] sm:$0xff] %v2277_v63  ;;  %v2295_v60 = vrot.slane %v1065_v39, %v1961_v22 }
  0x8a   : > { %2468 = vst [vmem:[#allocation31_spill] sm:$0xff] %v2280_v0  ;;  %2469 = vst [vmem:[#allocation32_spill] sm:$0xff] %v2283_v1 }
  0x8b   : > { %2470 = vst [vmem:[#allocation33_spill] sm:$0xff] %v2286_v12  ;;  %2471 = vst [vmem:[#allocation34_spill] sm:$0xff] %v2289_v21 }
  0x8c   : > { %2472 = vst [vmem:[#allocation35_spill] sm:$0xff] %v2292_v15  ;;  %2473 = vst [vmem:[#allocation36_spill] sm:$0xff] %v2295_v60 }
  0xe1   : > { %v475_v20 = vpop.permute.xlu1 %474  ;;  %v379_v30 = vpop.permute.xlu0 %378 }
  0xe2   : > { %v549_v59 = vmul.f32 %v1982_v32, %v475_v20  ;;  %v550_v2 = vmul.f32 %v1999_v40, %v475_v20  ;;  %v551_v58 = vmul.f32 %v2002_v41, %v475_v20  ;;  %v552_v1 = vmul.f32 %v2005_v42, %v475_v20 }
  0xe3   : > { %v553_v57 = vmul.f32 %v2008_v43, %v475_v20  ;;  %v554_v12 = vmul.f32 %v2011_v44, %v475_v20  ;;  %v555_v56 = vmul.f32 %v2014_v45, %v475_v20  ;;  %v556_v23 = vmul.f32 %v2017_v46, %v475_v20 }
  0xe4   : > { %v457_v15 = vmul.f32 %v2020_v47, %v379_v30  ;;  %v458_v22 = vmul.f32 %v2023_v48, %v379_v30  ;;  %v459_v32 = vmul.f32 %v2026_v49, %v379_v30  ;;  %v460_v40 = vmul.f32 %v2029_v50, %v379_v30 }
  0xe5   : > { %v461_v41 = vmul.f32 %v2034_v52, %v379_v30  ;;  %v462_v42 = vmul.f32 %v2037_v53, %v379_v30  ;;  %v463_v43 = vmul.f32 %v2040_v54, %v379_v30  ;;  %v464_v44 = vmul.f32 %v2043_v55, %v379_v30  ;;  %v374_v39 = vpop.permute.xlu0 %373 }
  0xe6   : > { %v465_v45 = vadd.f32 %v457_v15, %v374_v39  ;;  %v466_v60 = vadd.f32 %v458_v22, %v374_v39  ;;  %v467_v46 = vadd.f32 %v459_v32, %v374_v39  ;;  %v468_v20 = vadd.f32 %v460_v40, %v374_v39  ;;  %v567_v49 = vpop.permute.xlu1 %566 }
  0xe7   : > { %v469_v47 = vadd.f32 %v461_v41, %v374_v39  ;;  %v470_v21 = vadd.f32 %v462_v42, %v374_v39  ;;  %v471_v48 = vadd.f32 %v463_v43, %v374_v39  ;;  %v472_v0 = vadd.f32 %v464_v44, %v374_v39 }
  0xe8   : > { %v557_v63 = vadd.f32 %v549_v59, %v465_v45  ;;  %v558_v50 = vadd.f32 %v550_v2, %v466_v60  ;;  %v559_v62 = vadd.f32 %v551_v58, %v467_v46  ;;  %v560_v52 = vadd.f32 %v552_v1, %v468_v20  ;;  %v2475_v46 = vld [vmem:[#allocation18_spill] sm:$0xff] }
  0xe9   : > { %v561_v61 = vadd.f32 %v553_v57, %v469_v47  ;;  %v562_v53 = vadd.f32 %v554_v12, %v470_v21  ;;  %v563_v51 = vadd.f32 %v555_v56, %v471_v48  ;;  %v564_v54 = vadd.f32 %v556_v23, %v472_v0  ;;  %v2474_v56 = vld [vmem:[#allocation17_spill] sm:$0xff] }
  0xea   : > { %v641_v55 = vmul.f32 %v2078_v8, %v567_v49  ;;  %v642_v30 = vmul.f32 %v2081_v9, %v567_v49  ;;  %v643_v15 = vmul.f32 %v2084_v10, %v567_v49  ;;  %v644_v22 = vmul.f32 %v2087_v11, %v567_v49  ;;  %v659_v59 = vpop.permute.xlu0 %658 }
  0xeb   : > { %v645_v32 = vmul.f32 %v2090_v13, %v567_v49  ;;  %v646_v40 = vmul.f32 %v2093_v16, %v567_v49  ;;  %v647_v60 = vmul.f32 %v2096_v17, %v567_v49  ;;  %v648_v1 = vmul.f32 %v2099_v18, %v567_v49  ;;  %v752_v10 = vpop.permute.xlu1 %751 }
  0xec   : > { %v649_v12 = vadd.f32 %v641_v55, %v557_v63  ;;  %v650_v21 = vadd.f32 %v642_v30, %v558_v50  ;;  %v651_v0 = vadd.f32 %v643_v15, %v559_v62  ;;  %v652_v2 = vadd.f32 %v644_v22, %v560_v52 }
  0xed   : > { %v653_v8 = vadd.f32 %v645_v32, %v561_v61  ;;  %v654_v58 = vadd.f32 %v646_v40, %v562_v53  ;;  %v655_v9 = vadd.f32 %v647_v60, %v563_v51  ;;  %v656_v57 = vadd.f32 %v648_v1, %v564_v54  ;;  %v2481_v40 = vld [vmem:[#allocation24_spill] sm:$0xff]  ;;  %v2482_v1 = vld [vmem:[#allocation25_spill] sm:$0xff] }
  0xee   : > { %v733_v11 = vmul.f32 %v2108_v25, %v659_v59  ;;  %v734_v13 = vmul.f32 %v2111_v26, %v659_v59  ;;  %v735_v16 = vmul.f32 %v2114_v27, %v659_v59  ;;  %v736_v17 = vmul.f32 %v2117_v28, %v659_v59 }
  0xef   : > { %v737_v18 = vmul.f32 %v2126_v31, %v659_v59  ;;  %v738_v63 = vmul.f32 %v2129_v33, %v659_v59  ;;  %v739_v62 = vmul.f32 %v2132_v34, %v659_v59  ;;  %v740_v61 = vmul.f32 %v2474_v56, %v659_v59 }
  0xf0   : > { %v741_v23 = vadd.f32 %v733_v11, %v649_v12  ;;  %v742_v51 = vadd.f32 %v734_v13, %v650_v21  ;;  %v743_v41 = vadd.f32 %v735_v16, %v651_v0  ;;  %v744_v42 = vadd.f32 %v736_v17, %v652_v2  ;;  %v848_v47 = vpop.permute.xlu1 %847  ;;  %v2483_v12 = vld [vmem:[#allocation26_spill] sm:$0xff]  ;;  %v940_v0 = vpop.permute.xlu0 %939 }
  0xf1   : > { %v745_v43 = vadd.f32 %v737_v18, %v653_v8  ;;  %v746_v25 = vadd.f32 %v738_v63, %v654_v58  ;;  %v747_v44 = vadd.f32 %v739_v62, %v655_v9  ;;  %v748_v26 = vadd.f32 %v740_v61, %v656_v57 }
  0xf2   : > { %v830_v27 = vmul.f32 %v2170_v3, %v752_v10  ;;  %v831_v28 = vmul.f32 %v2173_v4, %v752_v10  ;;  %v832_v31 = vmul.f32 %v2176_v5, %v752_v10  ;;  %v833_v33 = vmul.f32 %v2179_v6, %v752_v10  ;;  %v2476_v5 = vld [vmem:[#allocation19_spill] sm:$0xff]  ;;  %v2477_v6 = vld [vmem:[#allocation20_spill] sm:$0xff] }
  0xf3   : > { %v834_v34 = vmul.f32 %v2182_v7, %v752_v10  ;;  %v835_v39 = vmul.f32 %v2185_v35, %v752_v10  ;;  %v836_v45 = vmul.f32 %v2188_v14, %v752_v10  ;;  %v837_v20 = vmul.f32 %v2475_v46, %v752_v10  ;;  %v2478_v7 = vld [vmem:[#allocation21_spill] sm:$0xff]  ;;  %v2479_v35 = vld [vmem:[#allocation22_spill] sm:$0xff]  ;;  %v2480_v14 = vld [vmem:[#allocation23_spill] sm:$0xff] }
  0xf4   : > { %v838_v48 = vadd.f32 %v830_v27, %v741_v23  ;;  %v839_v49 = vadd.f32 %v831_v28, %v742_v51  ;;  %v840_v50 = vadd.f32 %v832_v31, %v743_v41  ;;  %v841_v52 = vadd.f32 %v833_v33, %v744_v42  ;;  %v2484_v23 = vld [vmem:[#allocation27_spill] sm:$0xff]  ;;  %v2485_v41 = vld [vmem:[#allocation28_spill] sm:$0xff]  ;;  %v2490_v31 = vld [vmem:[#allocation33_spill] sm:$0xff] }
  0xf5   : > { %v842_v3 = vadd.f32 %v834_v34, %v745_v43  ;;  %v843_v53 = vadd.f32 %v835_v39, %v746_v25  ;;  %v844_v4 = vadd.f32 %v836_v45, %v747_v44  ;;  %v845_v54 = vadd.f32 %v837_v20, %v748_v26  ;;  %v1032_v16 = vpop.permute.xlu1 %1031  ;;  %v2486_v43 = vld [vmem:[#allocation29_spill] sm:$0xff]  ;;  %v2487_v44 = vld [vmem:[#allocation30_spill] sm:$0xff]  ;;  %v2488_v27 = vld [vmem:[#allocation31_spill] sm:$0xff] }
  0xf6   : > { %v922_v55 = vmul.f32 %v2476_v5, %v848_v47  ;;  %v923_v30 = vmul.f32 %v2477_v6, %v848_v47  ;;  %v924_v15 = vmul.f32 %v2478_v7, %v848_v47  ;;  %v925_v22 = vmul.f32 %v2479_v35, %v848_v47  ;;  %v2489_v28 = vld [vmem:[#allocation32_spill] sm:$0xff]  ;;  %v2491_v33 = vld [vmem:[#allocation34_spill] sm:$0xff]  ;;  %v2492_v34 = vld [vmem:[#allocation35_spill] sm:$0xff] }
  0xf7   : > { %v926_v32 = vmul.f32 %v2480_v14, %v848_v47  ;;  %v927_v60 = vmul.f32 %v2481_v40, %v848_v47  ;;  %v928_v59 = vmul.f32 %v2482_v1, %v848_v47  ;;  %v929_v21 = vmul.f32 %v2483_v12, %v848_v47  ;;  %v2493_v39 = vld [vmem:[#allocation36_spill] sm:$0xff] }
  0xf8   : > { %v930_v2 = vadd.f32 %v922_v55, %v838_v48  ;;  %v931_v8 = vadd.f32 %v923_v30, %v839_v49  ;;  %v932_v58 = vadd.f32 %v924_v15, %v840_v50  ;;  %v933_v9 = vadd.f32 %v925_v22, %v841_v52 }
  0xf9   : > { %v934_v57 = vadd.f32 %v926_v32, %v842_v3  ;;  %v935_v10 = vadd.f32 %v927_v60, %v843_v53  ;;  %v936_v11 = vadd.f32 %v928_v59, %v844_v4  ;;  %v937_v13 = vadd.f32 %v929_v21, %v845_v54 }
  0xfa   : > { %v1014_v17 = vmul.f32 %v2250_v19, %v940_v0  ;;  %v1015_v18 = vmul.f32 %v2253_v38, %v940_v0  ;;  %v1016_v63 = vmul.f32 %v2256_v24, %v940_v0  ;;  %v1017_v62 = vmul.f32 %v2259_v37, %v940_v0  ;;  %v1134_v5 = vpop.permute.xlu1 %1133 }
  0xfb   : > { %v1018_v56 = vmul.f32 %v2262_v29, %v940_v0  ;;  %v1019_v61 = vmul.f32 %v2265_v36, %v940_v0  ;;  %v1020_v51 = vmul.f32 %v2484_v23, %v940_v0  ;;  %v1021_v42 = vmul.f32 %v2485_v41, %v940_v0 }
  0xfc   : > { %v1106_v25 = vmul.f32 %v2486_v43, %v1032_v16  ;;  %v1107_v26 = vmul.f32 %v2487_v44, %v1032_v16  ;;  %v1108_v19 = vmul.f32 %v2488_v27, %v1032_v16  ;;  %v1109_v38 = vmul.f32 %v2489_v28, %v1032_v16 }
  0xfd   : > { %v1110_v24 = vmul.f32 %v2490_v31, %v1032_v16  ;;  %v1111_v37 = vmul.f32 %v2491_v33, %v1032_v16  ;;  %v1112_v29 = vmul.f32 %v2492_v34, %v1032_v16  ;;  %v1113_v36 = vmul.f32 %v2493_v39, %v1032_v16 }
  0xfe   : > { %v1022_v45 = vadd.f32 %v1014_v17, %v930_v2  ;;  %v1023_v46 = vadd.f32 %v1015_v18, %v931_v8  ;;  %v1024_v20 = vadd.f32 %v1016_v63, %v932_v58  ;;  %v1025_v47 = vadd.f32 %v1017_v62, %v933_v9 }
  0xff   : > { %v1026_v48 = vadd.f32 %v1018_v56, %v934_v57  ;;  %v1027_v49 = vadd.f32 %v1019_v61, %v935_v10  ;;  %v1028_v50 = vadd.f32 %v1020_v51, %v936_v11  ;;  %v1029_v52 = vadd.f32 %v1021_v42, %v937_v13 }
 0x100   : > { %v1114_v3 = vadd.f32 %v1106_v25, %v1022_v45  ;;  %v1115_v53 = vadd.f32 %v1107_v26, %v1023_v46  ;;  %v1116_v4 = vadd.f32 %v1108_v19, %v1024_v20  ;;  %v1117_v54 = vadd.f32 %v1109_v38, %v1025_v47 }
 0x101   : > { %v1118_v55 = vadd.f32 %v1110_v24, %v1026_v48  ;;  %v1119_v6 = vadd.f32 %v1111_v37, %v1027_v49  ;;  %v1120_v30 = vadd.f32 %v1112_v29, %v1028_v50  ;;  %v1121_v7 = vadd.f32 %v1113_v36, %v1029_v52 }
 0x102   : > { %v1122_v15 = vmax.f32 %v1114_v3, 0.0  ;;  %v1123_v35 = vmax.f32 %v1115_v53, 0.0  ;;  %v1124_v22 = vmax.f32 %v1116_v4, 0.0  ;;  %v1125_v14 = vmax.f32 %v1117_v54, 0.0  ;;  %v1196_v53 = vpop.permute.xlu0 %1195 }
 0x103   : > { %v1126_v32 = vmax.f32 %v1118_v55, 0.0  ;;  %v1127_v40 = vmax.f32 %v1119_v6, 0.0  ;;  %v1128_v60 = vmax.f32 %v1120_v30, 0.0  ;;  %v1129_v1 = vmax.f32 %v1121_v7, 0.0 }
 0x104   : > { %v1136_v59 = vmul.f32 %v1134_v5, %v1122_v15  ;;  %v1137_v12 = vmul.f32 %v1134_v5, %v1123_v35  ;;  %v1138_v21 = vmul.f32 %v1134_v5, %v1124_v22  ;;  %v1139_v0 = vmul.f32 %v1134_v5, %v1125_v14  ;;  %v2494_v15 = vld [vmem:[#allocation12_spill] sm:$0xff] }
 0x105   : > { %v1140_v2 = vmul.f32 %v1134_v5, %v1126_v32  ;;  %v1141_v8 = vmul.f32 %v1134_v5, %v1127_v40  ;;  %v1142_v58 = vmul.f32 %v1134_v5, %v1128_v60  ;;  %v1143_v9 = vmul.f32 %v1134_v5, %v1129_v1 }
 0x106   : > { %v1144_v57 = vrot.slane %v1136_v59, 4  ;;  %v1150_v10 = vrot.slane %v1137_v12, 4  ;;  %v1156_v11 = vrot.slane %v1138_v21, 4  ;;  %v1162_v13 = vrot.slane %v1139_v0, 4 }
 0x107   : > { %v1168_v16 = vrot.slane %v1140_v2, 4  ;;  %v1174_v17 = vrot.slane %v1141_v8, 4  ;;  %v1180_v18 = vrot.slane %v1142_v58, 4  ;;  %v1186_v63 = vrot.slane %v1143_v9, 4 }
 0x108   : > { %v1145_v62 = vadd.f32 %v1144_v57, %v1136_v59  ;;  %v1151_v56 = vadd.f32 %v1150_v10, %v1137_v12  ;;  %v1157_v61 = vadd.f32 %v1156_v11, %v1138_v21  ;;  %v1163_v23 = vadd.f32 %v1162_v13, %v1139_v0 }
 0x109   : > { %v1169_v51 = vadd.f32 %v1168_v16, %v1140_v2  ;;  %v1175_v41 = vadd.f32 %v1174_v17, %v1141_v8  ;;  %v1181_v42 = vadd.f32 %v1180_v18, %v1142_v58  ;;  %v1187_v43 = vadd.f32 %v1186_v63, %v1143_v9 }
 0x10a   : > { %v1146_v25 = vrot.slane %v1145_v62, 2  ;;  %v1152_v44 = vrot.slane %v1151_v56, 2  ;;  %v1158_v26 = vrot.slane %v1157_v61, 2  ;;  %v1164_v27 = vrot.slane %v1163_v23, 2 }
 0x10b   : > { %v1170_v19 = vrot.slane %v1169_v51, 2  ;;  %v1176_v28 = vrot.slane %v1175_v41, 2  ;;  %v1182_v38 = vrot.slane %v1181_v42, 2  ;;  %v1188_v31 = vrot.slane %v1187_v43, 2 }
 0x10c   : > { %v1147_v24 = vadd.f32 %v1146_v25, %v1145_v62  ;;  %v1153_v33 = vadd.f32 %v1152_v44, %v1151_v56  ;;  %v1159_v37 = vadd.f32 %v1158_v26, %v1157_v61  ;;  %v1165_v34 = vadd.f32 %v1164_v27, %v1163_v23 }
 0x10d   : > { %v1171_v29 = vadd.f32 %v1170_v19, %v1169_v51  ;;  %v1177_v39 = vadd.f32 %v1176_v28, %v1175_v41  ;;  %v1183_v36 = vadd.f32 %v1182_v38, %v1181_v42  ;;  %v1189_v45 = vadd.f32 %v1188_v31, %v1187_v43 }
 0x10e   : > { %v1148_v46 = vrot.slane %v1147_v24, 1  ;;  %v1154_v20 = vrot.slane %v1153_v33, 1  ;;  %v1160_v47 = vrot.slane %v1159_v37, 1  ;;  %v1166_v48 = vrot.slane %v1165_v34, 1 }
 0x10f   : > { %v1172_v49 = vrot.slane %v1171_v29, 1  ;;  %v1178_v50 = vrot.slane %v1177_v39, 1  ;;  %v1184_v52 = vrot.slane %v1183_v36, 1  ;;  %v1190_v3 = vrot.slane %v1189_v45, 1 }
 0x110   : > { %v1149_v4 = vadd.f32 %v1148_v46, %v1147_v24  ;;  %v1155_v54 = vadd.f32 %v1154_v20, %v1153_v33  ;;  %v1161_v5 = vadd.f32 %v1160_v47, %v1159_v37  ;;  %v1167_v55 = vadd.f32 %v1166_v48, %v1165_v34  ;;  %v2495_v37 = vld [vmem:[#allocation13_spill] sm:$0xff]  ;;  %v2497_v48 = vld [vmem:[#allocation15_spill] sm:$0xff] }
 0x111   : > { %v1173_v6 = vadd.f32 %v1172_v49, %v1171_v29  ;;  %v1179_v30 = vadd.f32 %v1178_v50, %v1177_v39  ;;  %v1185_v7 = vadd.f32 %v1184_v52, %v1183_v36  ;;  %v1201_v35 = vrot.slane %v1196_v53, %v2494_v15  ;;  %v2498_v50 = vld [vmem:[#allocation16_spill] sm:$0xff] }
 0x112   : > { %v1191_v22 = vadd.f32 %v1190_v3, %v1189_v45  ;;  %v2496_v45 = vld [vmem:[#allocation14_spill] sm:$0xff] }
 0x113   : > { %v1202_v14 = vadd.f32 %v1201_v35, %v1149_v4  ;;  %v1203_v32 = vadd.f32 %v1201_v35, %v1155_v54  ;;  %v1204_v40 = vadd.f32 %v1201_v35, %v1161_v5  ;;  %v1205_v60 = vadd.f32 %v1201_v35, %v1167_v55 }
 0x114   : > { %v1206_v1 = vadd.f32 %v1201_v35, %v1173_v6  ;;  %v1207_v59 = vadd.f32 %v1201_v35, %v1179_v30  ;;  %v1208_v12 = vadd.f32 %v1201_v35, %v1185_v7  ;;  %v1209_v8 = vadd.f32 %v1201_v35, %v1191_v22 }
 0x115   : > { %v1423_v21 = vmul.f32 -1.442695, %v1202_v14  ;;  %v1424_v0 = vmul.f32 -1.442695, %v1203_v32  ;;  %v1425_v2 = vmul.f32 -1.442695, %v1204_v40 }
 0x116   : > { %v1426_v58 = vmul.f32 -1.442695, %v1205_v60  ;;  %v1427_v9 = vmul.f32 -1.442695, %v1206_v1  ;;  %v1428_v57 = vmul.f32 -1.442695, %v1207_v59 }
 0x117   : > { %1520 = vpow2.f32 %v1423_v21  ;;  %v1429_v10 = vmul.f32 -1.442695, %v1208_v12  ;;  %v1430_v11 = vmul.f32 -1.442695, %v1209_v8 }
 0x118   : > { %1522 = vpow2.f32 %v1424_v0 }
 0x119   : > { %1524 = vpow2.f32 %v1425_v2 }
 0x11a   : > { %1526 = vpow2.f32 %v1426_v58 }
 0x11b   : > { %1528 = vpow2.f32 %v1427_v9 }
 0x11c   : > { %1530 = vpow2.f32 %v1428_v57 }
 0x11d   : > { %1532 = vpow2.f32 %v1429_v10 }
 0x11e   : > { %1534 = vpow2.f32 %v1430_v11 }
 0x121   : > { %v1521_v13 = vpop.eup %1520 }
 0x122   : > { %v1523_v16 = vpop.eup %1522  ;;  %v1234_v17 = vadd.f32 1.0, %v1521_v13 }
 0x123   : > { %v1525_v18 = vpop.eup %1524  ;;  %v1235_v63 = vadd.f32 1.0, %v1523_v16 }
 0x124   : > { %v1527_v62 = vpop.eup %1526  ;;  %v1236_v56 = vadd.f32 1.0, %v1525_v18  ;;  %1536 = vrcp.f32 %v1234_v17 }
 0x125   : > { %v1529_v61 = vpop.eup %1528  ;;  %v1237_v23 = vadd.f32 1.0, %v1527_v62  ;;  %1538 = vrcp.f32 %v1235_v63 }
 0x126   : > { %v1531_v51 = vpop.eup %1530  ;;  %v1238_v41 = vadd.f32 1.0, %v1529_v61  ;;  %1540 = vrcp.f32 %v1236_v56 }
 0x127   : > { %v1533_v42 = vpop.eup %1532  ;;  %v1239_v43 = vadd.f32 1.0, %v1531_v51  ;;  %1542 = vrcp.f32 %v1237_v23 }
 0x128   : > { %v1535_v25 = vpop.eup %1534  ;;  %v1240_v44 = vadd.f32 1.0, %v1533_v42  ;;  %1544 = vrcp.f32 %v1238_v41 }
 0x129   : > { %v1241_v26 = vadd.f32 1.0, %v1535_v25  ;;  %1546 = vrcp.f32 %v1239_v43 }
 0x12a   : > { %1548 = vrcp.f32 %v1240_v44 }
 0x12b   : > { %1550 = vrcp.f32 %v1241_v26 }
 0x12e   : > { %v1537_v27 = vpop.eup %1536 }
 0x12f   : > { %v1539_v19 = vpop.eup %1538 }
 0x130   : > { %v1541_v28 = vpop.eup %1540  ;;  %v1266_v38 = vcombine.low %v1537_v27, %v1539_v19 }
 0x131   : > { %v1543_v31 = vpop.eup %1542 }
 0x132   : > { %v1545_v24 = vpop.eup %1544  ;;  %v1267_v33 = vcombine.low %v1541_v28, %v1543_v31  ;;  %v1274_v34 = vmul.f32 %v1266_v38, %v2495_v37 }
 0x133   : > { %v1547_v29 = vpop.eup %1546 }
 0x134   : > { %v1549_v39 = vpop.eup %1548  ;;  %v1268_v36 = vcombine.low %v1545_v24, %v1547_v29  ;;  %v1275_v46 = vmul.f32 %v1267_v33, %v2496_v45  ;;  %1278 = vst [vmem:[%s356_s21] sm:$0xff] %v1274_v34 }
 0x135   : > { %v1551_v20 = vpop.eup %1550 }
 0x136   : > { %v1269_v47 = vcombine.low %v1549_v39, %v1551_v20  ;;  %v1276_v49 = vmul.f32 %v1268_v36, %v2497_v48  ;;  %1279 = vst [vmem:[%s356_s21 + $0x8] sm:$0xff] %v1275_v46 }
 0x138   : > { %v1277_v52 = vmul.f32 %v1269_v47, %v2498_v50  ;;  %1280 = vst [vmem:[%s356_s21 + $0x10] sm:$0xff] %v1276_v49 }
 0x13a   : > { %1281 = vst [vmem:[%s356_s21 + $0x18] sm:$0xff] %v1277_v52 }
 0x13b   : > { %1625 = shalt.err (!%p1622_p2)
}
 0x13c   : > { %s1626_s25 = scalar_lea.hbm %s2371_s24, 512  ;;  %s1630_s13 = scalar_lea.hbm %s2427_s7, 1024 }
 0x13d   : > { %p1627_p9 = scmp.ne.s32.totalorder %s2371_s24, %s1626_s25  ;;  %p1631_p6 = scmp.lt.u32.totalorder %s2371_s24, %s2427_s7 }
 0x13e   : > { %p1632_p13 = scmp.lt.u32.totalorder %s1630_s13, %s1626_s25  ;;  %p1634_p0 = scmp.lt.u32.totalorder %s1626_s25, %s2371_s24 }
 0x13f   : > { %p1628_p11 = pnand %p1627_p9, %p2499_p5 }
 0x140   : > { %p1633_p8 = por %p1632_p13, %p1631_p6 }
 0x141   : > { %p1629_p3 = pneg %p1628_p11 }
 0x142   : > { %p1635_p7 = por %p1634_p0, %p1633_p8 }
 0x144   : > { %p1636_p4 = pnand %p1635_p7, %p1629_p3 }
 0x146   : > { %1639 = shalt.err (!%p1636_p4)
}
 0x147   : > { %1443 = dma.vmem_to_hbm [thread:$0]  (%p2499_p5), %s2373_s19, 512, %s2371_s24, %s1283_s29  }
 0x148 PF: > { %s1311_s20 = sand.u32 1, %s1678_s26   ;;  %p2500_p10 = scmp.ne.s32.totalorder %s2440_s17, 0 }
 0x149   : > { %p2501_p12 = scmp.ge.s32.totalorder %s1698_s8, 2  ;;  %s1312_s6 = scalar_lea.sflag [#allocation5], %s1311_s20 }
 0x14b   : > { %p1453_p1 = pnand %p2501_p12, %p2500_p10 }
 0x14d   : > { %1673 = dma.done.wait (!%p1453_p1), %s1312_s6, 512  }
 0x14e   : > { %1675 = vsyncadd (!%p1453_p1), %s1312_s6, 4294966784  ;;  %s28_s8 = sadd.s32 1, %s1698_s8   ;;  %s2502_s26 = smov %s1682_s27 }
 0x14f   : > { %p25_p2 = scmp.ge.s32.totalorder %s28_s8, 4   ;;  %s2503_s27 = smov %s1686_s28 }
 0x150   : > { %s2504_s28 = smov %s1806_s16  ;;  %s2505_s29 = smov %s1694_s30 }
 0x151   : > { %s2506_s30 = smov %s2508_s10  ;;  %27 = sbr.rel (!%p25_p2) target bundleno = 11 (0xb), region = 106 }
 0x158   :  { %1317 = vsyncpa [#allocation4], 1 }
 0x159   :  { %1319 = vsyncpa [#allocation4 + $0x1], 1 }
 0x15a   :  { %1320 = vsyncpa [#allocation7], 1 }
 0x15b   :  { %1322 = vsyncpa [#allocation7 + $0x1], 1 }
 0x15c   :  { %1323 = vsyncpa [#allocation5], 1 }
 0x15d   :  { %1325 = vsyncpa [#allocation5 + $0x1], 1 }

</bundles_post_ra>
